<compile_context>
chip_gen: v6e
topology: v6e:2x2x1
jax: 0.10.0
libtpu: 0.0.40
codegen_flags: <defaults>
</compile_context>

<pallas_src>
import jax
import jax.numpy as jnp
from jax.experimental import pallas as pl
from jax.experimental.pallas import tpu as pltpu


def _ffg_local_kernel(x_ref, wm_ref, wv_ref, bm_ref, bv_ref, eps_ref,
                      out_ref, mean_sc, std_sc):
    """Grid = (row_tiles, dout_tiles, sample_blocks); sample axis innermost."""
    # mean/std for this (row-tile, dout-tile) are identical for every sample
    # block -> compute them once on the first sample step and keep in scratch.
    @pl.when(pl.program_id(2) == 0)
    def _():
        x = x_ref[...]                                   # native dtype -> MXU
        act_mean = jnp.dot(x, wm_ref[...],
                           preferred_element_type=jnp.float32)
        act_var = jnp.dot(x * x, wv_ref[...],
                          preferred_element_type=jnp.float32)
        act_mean = act_mean + bm_ref[...].astype(jnp.float32)
        act_var = act_var + bv_ref[...].astype(jnp.float32)
        mean_sc[...] = act_mean
        std_sc[...] = jnp.sqrt(act_var)

    # Local-reparameterization sample for this block of samples.
    eps = eps_ref[...].astype(jnp.float32)               # (s_blk, n_t, do_t)
    out_ref[...] = (mean_sc[...][None, :, :]
                    + std_sc[...][None, :, :] * eps).astype(out_ref.dtype)


def _pick_tile(dim, target):
    """Largest tile <= target that divides dim; falls back to the full dim."""
    t = min(dim, target)
    return t if dim % t == 0 else dim


def ffg_layer_local_forward(x_data, w_mean, w_logstd, b_mean, b_logstd, eps,
                            *, n_tile=None, dout_tile=None, s_block=None):
    """FFGLayer._local_forward for 2-D input.

    Args:
      x_data:   [N, input_dim]
      w_mean:   [input_dim, output_dim]
      w_logstd: [input_dim, output_dim]
      b_mean:   [1, output_dim]
      b_logstd: [1, output_dim]
      eps:      [num_samples, N, output_dim] standard-normal noise

    Returns:
      samples:  [num_samples, N, output_dim]
    """
    n, d_in = x_data.shape
    d_out = w_mean.shape[1]
    num_samples = eps.shape[0]

    # Hoist the exp out of the kernel: one EUP pass, overlapped by XLA with
    # the pallas_call's initial DMAs (and not redone per row tile).
    w_var = jnp.exp(2.0 * w_logstd).astype(w_mean.dtype)
    b_var = jnp.exp(2.0 * b_logstd).astype(b_mean.dtype)

    # Tile selection (must divide the corresponding dims).
    n_tile = _pick_tile(n, 256) if n_tile is None else n_tile
    dout_tile = _pick_tile(d_out, 512) if dout_tile is None else dout_tile
    s_block = _pick_tile(num_samples, 8) if s_block is None else s_block
    assert n % n_tile == 0 and d_out % dout_tile == 0
    assert num_samples % s_block == 0

    grid = (n // n_tile, d_out // dout_tile, num_samples // s_block)

    grid_spec = pltpu.PrefetchScalarGridSpec(
        num_scalar_prefetch=0,
        grid=grid,
        in_specs=[
            # x: one row tile, full d_in (reused across d_out tiles / samples)
            pl.BlockSpec((n_tile, d_in), lambda i, j, s: (i, 0)),
            # weights / variances: full d_in, one d_out tile
            pl.BlockSpec((d_in, dout_tile), lambda i, j, s: (0, j)),
            pl.BlockSpec((d_in, dout_tile), lambda i, j, s: (0, j)),
            # biases / bias variances
            pl.BlockSpec((1, dout_tile), lambda i, j, s: (0, j)),
            pl.BlockSpec((1, dout_tile), lambda i, j, s: (0, j)),
            # eps: a block of samples for this (row, d_out) tile
            pl.BlockSpec((s_block, n_tile, dout_tile),
                         lambda i, j, s: (s, i, j)),
        ],
        out_specs=pl.BlockSpec((s_block, n_tile, dout_tile),
                               lambda i, j, s: (s, i, j)),
        scratch_shapes=[
            pltpu.VMEM((n_tile, dout_tile), jnp.float32),   # act_mean
            pltpu.VMEM((n_tile, dout_tile), jnp.float32),   # act_std
        ],
    )

    return pl.pallas_call(
        _ffg_local_kernel,
        out_shape=jax.ShapeDtypeStruct((num_samples, n, d_out), x_data.dtype),
        grid_spec=grid_spec,
        compiler_params=pltpu.CompilerParams(
            # row / d_out tiles are independent (megacore-shardable);
            # the sample axis carries the mean/std scratch -> sequential.
            dimension_semantics=("parallel", "parallel", "arbitrary"),
            vmem_limit_bytes=48 * 1024 * 1024,
        ),
    )(x_data, w_mean, w_var, b_mean, b_var, eps)


def init_ffg_params(key, input_dim, output_dim):
    """Deterministic init following FFGLayer._build_variational_posterior."""
    w_mean_scale = 1.0 / jnp.sqrt(2.0 * output_dim)
    w_mean = w_mean_scale * jax.random.normal(key, (input_dim, output_dim),
                                              dtype=jnp.float32)
    b_mean = jnp.zeros((1, output_dim), dtype=jnp.float32)
    logstd = -5.0 * jnp.log(10.0)
    w_logstd = jnp.full((input_dim, output_dim), logstd, dtype=jnp.float32)
    b_logstd = jnp.full((1, output_dim), logstd, dtype=jnp.float32)
    return w_mean, w_logstd, b_mean, b_logstd


if __name__ == "__main__":
    key = jax.random.PRNGKey(0)
    k_param, k_x, k_eps = jax.random.split(key, 3)

    # Small shapes, but large enough to exercise the tiled 3-D grid:
    # 2 row tiles x 1 d_out tile x 2 sample blocks. d_out = 128 keeps the
    # output lane-dense.
    N, input_dim, output_dim, num_samples = 256, 128, 128, 4

    w_mean, w_logstd, b_mean, b_logstd = init_ffg_params(k_param, input_dim,
                                                         output_dim)
    x = jax.random.normal(k_x, (N, input_dim), dtype=jnp.float32)
    eps = jax.random.normal(k_eps, (num_samples, N, output_dim),
                            dtype=jnp.float32)

    out = ffg_layer_local_forward(x, w_mean, w_logstd, b_mean, b_logstd, eps,
                                  n_tile=128, dout_tile=128, s_block=2)
    out = jax.block_until_ready(out)

    # Pure-JAX reference for the same local-reparam samples (same eps).
    act_mean = x @ w_mean + b_mean
    act_var = (x ** 2) @ jnp.exp(w_logstd) ** 2 + jnp.exp(b_logstd) ** 2
    ref = act_mean[None] + jnp.sqrt(act_var)[None] * eps

    assert out.shape == (num_samples, N, output_dim)
    assert jnp.allclose(out, ref, atol=1e-4, rtol=1e-4), (
        float(jnp.max(jnp.abs(out - ref))))
    print("KERNEL_OK")
</pallas_src>

<mosaic_0001>
module attributes {stable_mosaic.version = 11 : i64} {
  func.func @_ffg_local_kernel(%arg0: i32, %arg1: i32, %arg2: i32, %arg3: memref<128x128xf32, #tpu.memory_space<vmem>>, %arg4: memref<128x128xf32, #tpu.memory_space<vmem>>, %arg5: memref<128x128xf32, #tpu.memory_space<vmem>>, %arg6: memref<1x128xf32, #tpu.memory_space<vmem>>, %arg7: memref<1x128xf32, #tpu.memory_space<vmem>>, %arg8: memref<2x128x128xf32, #tpu.memory_space<vmem>>, %arg9: memref<2x128x128xf32, #tpu.memory_space<vmem>>, %arg10: memref<128x128xf32, #tpu.memory_space<vmem>>, %arg11: memref<128x128xf32, #tpu.memory_space<vmem>>) attributes {dimension_semantics = [#tpu.dimension_semantics<parallel>, #tpu.dimension_semantics<parallel>, #tpu.dimension_semantics<arbitrary>], iteration_bounds = array<i64: 2, 1, 2>, scalar_prefetch = 0 : i64, scratch_operands = 2 : i64, tpu.core_type = #tpu.core_type<tc>, window_params = [{transform_indices = @transform_0, window_bounds = array<i64: 128, 128>}, {transform_indices = @transform_1, window_bounds = array<i64: 128, 128>}, {transform_indices = @transform_2, window_bounds = array<i64: 128, 128>}, {transform_indices = @transform_3, window_bounds = array<i64: 1, 128>}, {transform_indices = @transform_4, window_bounds = array<i64: 1, 128>}, {transform_indices = @transform_5, window_bounds = array<i64: 2, 128, 128>}, {transform_indices = @transform_6, window_bounds = array<i64: 2, 128, 128>}]} {
    %c0_i32 = arith.constant 0 : i32
    %0 = arith.cmpi eq, %arg2, %c0_i32 : i32
    %1 = arith.extui %0 : i1 to i32
    %c0_i32_0 = arith.constant 0 : i32
    %2 = arith.cmpi ne, %1, %c0_i32_0 : i32
    scf.if %2 {
      %c0_10 = arith.constant 0 : index
      %c0_11 = arith.constant 0 : index
      %13 = vector.load %arg3[%c0_10, %c0_11] : memref<128x128xf32, #tpu.memory_space<vmem>>, vector<128x128xf32>
      %c0_12 = arith.constant 0 : index
      %c0_13 = arith.constant 0 : index
      %14 = vector.load %arg4[%c0_12, %c0_13] : memref<128x128xf32, #tpu.memory_space<vmem>>, vector<128x128xf32>
      %cst = arith.constant dense<0.000000e+00> : vector<128x128xf32>
      %15 = tpu.matmul %13, %14, %cst {dimension_numbers = #tpu.dot_dimension_numbers<[1], [0], [0], [1], [0, 0, 1, 1], [], []>} : vector<128x128xf32>, vector<128x128xf32>, vector<128x128xf32> -> vector<128x128xf32>
      %16 = arith.mulf %13, %13 : vector<128x128xf32>
      %c0_14 = arith.constant 0 : index
      %c0_15 = arith.constant 0 : index
      %17 = vector.load %arg5[%c0_14, %c0_15] : memref<128x128xf32, #tpu.memory_space<vmem>>, vector<128x128xf32>
      %cst_16 = arith.constant dense<0.000000e+00> : vector<128x128xf32>
      %18 = tpu.matmul %16, %17, %cst_16 {dimension_numbers = #tpu.dot_dimension_numbers<[1], [0], [0], [1], [0, 0, 1, 1], [], []>} : vector<128x128xf32>, vector<128x128xf32>, vector<128x128xf32> -> vector<128x128xf32>
      %c0_17 = arith.constant 0 : index
      %c0_18 = arith.constant 0 : index
      %19 = vector.load %arg6[%c0_17, %c0_18] : memref<1x128xf32, #tpu.memory_space<vmem>>, vector<1x128xf32>
      %20 = vector.broadcast %19 : vector<1x128xf32> to vector<128x128xf32>
      %21 = arith.addf %15, %20 : vector<128x128xf32>
      %c0_19 = arith.constant 0 : index
      %c0_20 = arith.constant 0 : index
      %22 = vector.load %arg7[%c0_19, %c0_20] : memref<1x128xf32, #tpu.memory_space<vmem>>, vector<1x128xf32>
      %23 = vector.broadcast %22 : vector<1x128xf32> to vector<128x128xf32>
      %24 = arith.addf %18, %23 : vector<128x128xf32>
      %c0_21 = arith.constant 0 : index
      %c0_22 = arith.constant 0 : index
      %25 = vector.load %arg10[%c0_21, %c0_22] : memref<128x128xf32, #tpu.memory_space<vmem>>, vector<128x128xf32>
      tpu.vector_store %arg10[%c0_21, %c0_22], %21 {strides = array<i32>} : memref<128x128xf32, #tpu.memory_space<vmem>>, vector<128x128xf32>,
      %26 = math.sqrt %24 : vector<128x128xf32>
      %c0_23 = arith.constant 0 : index
      %c0_24 = arith.constant 0 : index
      %27 = vector.load %arg11[%c0_23, %c0_24] : memref<128x128xf32, #tpu.memory_space<vmem>>, vector<128x128xf32>
      tpu.vector_store %arg11[%c0_23, %c0_24], %26 {strides = array<i32>} : memref<128x128xf32, #tpu.memory_space<vmem>>, vector<128x128xf32>,
    } else {
    }
    %c0 = arith.constant 0 : index
    %c0_1 = arith.constant 0 : index
    %c0_2 = arith.constant 0 : index
    %3 = vector.load %arg8[%c0, %c0_1, %c0_2] : memref<2x128x128xf32, #tpu.memory_space<vmem>>, vector<2x128x128xf32>
    %c0_3 = arith.constant 0 : index
    %c0_4 = arith.constant 0 : index
    %4 = vector.load %arg10[%c0_3, %c0_4] : memref<128x128xf32, #tpu.memory_space<vmem>>, vector<128x128xf32>
    %5 = vector.shape_cast %4 : vector<128x128xf32> to vector<1x128x128xf32>
    %c0_5 = arith.constant 0 : index
    %c0_6 = arith.constant 0 : index
    %6 = vector.load %arg11[%c0_5, %c0_6] : memref<128x128xf32, #tpu.memory_space<vmem>>, vector<128x128xf32>
    %7 = vector.shape_cast %6 : vector<128x128xf32> to vector<1x128x128xf32>
    %8 = vector.broadcast %7 : vector<1x128x128xf32> to vector<2x128x128xf32>
    %9 = arith.mulf %8, %3 : vector<2x128x128xf32>
    %10 = vector.broadcast %5 : vector<1x128x128xf32> to vector<2x128x128xf32>
    %11 = arith.addf %10, %9 : vector<2x128x128xf32>
    %c0_7 = arith.constant 0 : index
    %c0_8 = arith.constant 0 : index
    %c0_9 = arith.constant 0 : index
    %12 = vector.load %arg9[%c0_7, %c0_8, %c0_9] : memref<2x128x128xf32, #tpu.memory_space<vmem>>, vector<2x128x128xf32>
    tpu.vector_store %arg9[%c0_7, %c0_8, %c0_9], %11 {strides = array<i32>} : memref<2x128x128xf32, #tpu.memory_space<vmem>>, vector<2x128x128xf32>,
    return
  }
  func.func @transform_0(%arg0: i32, %arg1: i32, %arg2: i32) -> (i32, i32) {
    %c0_i32 = arith.constant 0 : i32
    %c0_i32_0 = arith.constant 0 : i32
    return %arg0, %c0_i32 : i32, i32
  }
  func.func @transform_1(%arg0: i32, %arg1: i32, %arg2: i32) -> (i32, i32) {
    %c0_i32 = arith.constant 0 : i32
    %c0_i32_0 = arith.constant 0 : i32
    return %c0_i32, %arg1 : i32, i32
  }
  func.func @transform_2(%arg0: i32, %arg1: i32, %arg2: i32) -> (i32, i32) {
    %c0_i32 = arith.constant 0 : i32
    %c0_i32_0 = arith.constant 0 : i32
    return %c0_i32, %arg1 : i32, i32
  }
  func.func @transform_3(%arg0: i32, %arg1: i32, %arg2: i32) -> (i32, i32) {
    %c0_i32 = arith.constant 0 : i32
    %c0_i32_0 = arith.constant 0 : i32
    return %c0_i32, %arg1 : i32, i32
  }
  func.func @transform_4(%arg0: i32, %arg1: i32, %arg2: i32) -> (i32, i32) {
    %c0_i32 = arith.constant 0 : i32
    %c0_i32_0 = arith.constant 0 : i32
    return %c0_i32, %arg1 : i32, i32
  }
  func.func @transform_5(%arg0: i32, %arg1: i32, %arg2: i32) -> (i32, i32, i32) {
    %c0_i32 = arith.constant 0 : i32
    return %arg2, %arg0, %arg1 : i32, i32, i32
  }
  func.func @transform_6(%arg0: i32, %arg1: i32, %arg2: i32) -> (i32, i32, i32) {
    %c0_i32 = arith.constant 0 : i32
    return %arg2, %arg0, %arg1 : i32, i32, i32
  }
}

</mosaic_0001>

<bundles_post_ra>
// kernel: tpu_custom_call.1
= control target key start
LH: loop header
LB: loop body
LE: loop exit
PB: predicated region body
PF: predicated region fallthrough
CT: control target
= control target key end

     0   :  { %s2644_s0 = inlined_call_operand.hbm [shape: f32[256,128], index: 0, kind: input, shape index: {}]   ;;  %s2645_s1 = inlined_call_operand.hbm [shape: f32[128,128], index: 1, kind: input, shape index: {}]   ;;  %s2646_s2 = inlined_call_operand.hbm [shape: f32[128,128], index: 2, kind: input, shape index: {}]   ;;  %s2647_s3 = inlined_call_operand.vmem [shape: f32[1,128], index: 3, kind: input, shape index: {}]   ;;  %s2648_s4 = inlined_call_operand.vmem [shape: f32[1,128], index: 4, kind: input, shape index: {}]   ;;  %s2649_s5 = inlined_call_operand.hbm [shape: f32[4,256,128], index: 5, kind: input, shape index: {}]   ;;  %s2650_s6 = inlined_call_operand.hbm [shape: f32[4,256,128], index: 6, kind: output, shape index: {}]  }
   0x1   :  { %2663 = sst [smem:[#allocation31_spill]] %s2645_s1 }
   0x2   :  { %2664 = sst [smem:[#allocation32_spill]] %s2647_s3 }
   0x3   :  { %2665 = sst [smem:[#allocation33_spill]] %s2648_s4 }
   0x4   :  { %2666 = sst [smem:[#allocation34_spill]] %s2650_s6 }
   0x5   :  { %11 = vsyncpa [#allocation5], 0 }
   0x6   :  { %13 = vsyncpa [#allocation5 + $0x1], 0 }
   0x7   :  { %14 = vsyncpa [#allocation8], 0 }
   0x8   :  { %15 = vsyncpa [#allocation11], 0 }
   0x9   :  { %17 = vsyncpa [#allocation11 + $0x1], 0 }
   0xa   :  { %18 = vsyncpa [#allocation6], 0 }
   0xb   :  { %20 = vsyncpa [#allocation6 + $0x1], 0  ;;  %s1956_s21 = smov 0   ;;  %s1958_s22 = smov 0  }
   0xc   :  { %s1960_s23 = smov 0   ;;  %s1962_s24 = smov 0  }
   0xd   :  { %s1964_s25 = smov 0   ;;  %s1966_s26 = smov 0  }
   0xe   :  { %s1968_s27 = smov 0   ;;  %s1970_s28 = smov 0  }
   0xf   :  { %s1972_s29 = smov 0   ;;  %s1974_s30 = smov 0  }
  0x10   :  { %s1976_s7 = smov 0  }
  0x11 LB: > { %2667 = sst [smem:[#allocation22_spill]] %s1859_s21  ;;  %s1324_s8 = sadd.s32 4294967295, %s1899_s7   ;;  %s1899_s7 = sphi %s1976_s7, %s26_s7   ;;  %s1895_s30 = sphi %s1974_s30, %s2714_s30   ;;  %s1891_s29 = sphi %s1972_s29, %s2713_s29   ;;  %s1887_s28 = sphi %s1970_s28, %s2712_s28   ;;  %s1883_s27 = sphi %s1968_s27, %s2711_s27   ;;  %s1879_s26 = sphi %s1966_s26, %s2710_s26   ;;  %s1875_s25 = sphi %s1964_s25, %s2709_s25   ;;  %s1871_s24 = sphi %s1962_s24, %s2708_s24   ;;  %s1867_s23 = sphi %s1960_s23, %s2707_s23   ;;  %s1863_s22 = sphi %s1958_s22, %s2706_s22   ;;  %s1859_s21 = sphi %s1956_s21, %s2705_s21  }
  0x12   : > { %2668 = sst [smem:[#allocation23_spill]] %s1883_s27  ;;  %s1325_s9 = sadd.s32 4294967294, %s1899_s7  }
  0x13   : > { %2669 = sst [smem:[#allocation24_spill]] %s1887_s28  ;;  %s38_s10 = sadd.s32 1, %s1891_s29 }
  0x14   : > { %s45_s11 = sadd.s32 1, %s1895_s30  ;;  %p39_p0 = scmp.ge.s32.totalorder %s38_s10, 2 }
  0x15   : > { %s52_s12 = sadd.s32 1, %s1879_s26  ;;  %p59_p1 = scmp.ne.s32.totalorder %s1879_s26, %s1875_s25 }
  0x16   : > { %p60_p2 = scmp.eq.s32.totalorder %s1899_s7, 0  ;;  %s2716_s10 = smov (%p39_p0, %s38_s10), 0 }
  0x17   : > { %2670 = sst [smem:[#allocation25_spill]] %s2716_s10  ;;  %s2718_s11 = smov (!%p39_p0, %s45_s11), %s1895_s30 }
  0x18   : > { %p2022_p3 = por %p60_p2, %p59_p1  ;;  %p65_p4 = scmp.ne.s32.totalorder %s1875_s25, %s1871_s24 }
  0x19   : > { %p47_p5 = scmp.ge.s32.totalorder %s2718_s11, 2  ;;  %p2027_p6 = scmp.eq.s32.totalorder %s1324_s8, 0 }
  0x1a   : > { %s179_s15 = ssub.s32 %s1891_s29, %s2716_s10  ;;  %s186_s16 = sadd.s32 1, %s1867_s23 }
  0x1b   : > { %s2672_s14 = scalar_select %p2027_p6, 1, 0 }
  0x1c   : > { %s2720_s11 = smov (%p47_p5, %s2718_s11), 0  ;;  %p2038_p7 = por %p2027_p6, %p65_p4 }
  0x1d   : > { %2673 = sst [smem:[#allocation26_spill]] %s2720_s11  ;;  %p193_p8 = scmp.ne.s32.totalorder %s1867_s23, %s1863_s22 }
  0x1e   : > { %s2674_s17 = scalar_select %p2038_p7, 1, 0 }
  0x1f   : > { %s49_s18 = ssub.s32 %s1895_s30, %s2720_s11  ;;  %p199_p9 = scmp.ne.s32.totalorder %s1863_s22, %s1859_s21 }
  0x20   : > { %p50_p10 = scmp.eq.s32.totalorder %s49_s18, 0  ;;  %s181_s19 = sor.u32 %s179_s15, %s49_s18 }
  0x21   : > { %p184_p11 = scmp.eq.s32.totalorder %s181_s19, 0  ;;  %p2053_p12 = por %p193_p8, %p60_p2 }
  0x22   : > { %s2058_s24 = scalar_select %p50_p10, %s1879_s26, %s52_s12  }
  0x23   : > { %s2061_s10 = scalar_select %p184_p11, %s1867_s23, %s186_s16  }
  0x24   : > { %2676 = sst [smem:[#allocation27_spill]] %s2058_s24  ;;  %p2068_p13 = por %p199_p9, %p2027_p6 }
  0x25   : > { %2677 = sst [smem:[#allocation28_spill]] %s2061_s10  ;;  %p227_p0 = scmp.eq.s32.totalorder %s1324_s8, 3 }
  0x26   : > { %s2678_s6 = scalar_select %p2068_p13, 1, 0 }
  0x27   : > { %p233_p1 = scmp.eq.s32.totalorder %s1325_s9, 3  ;;  %p1326_p4 = scmp.ge.s32.totalorder %s1899_s7, 1 }
  0x28   : > { %p2076_p5 = por %p227_p0, %p193_p8  ;;  %p240_p2 = scmp.lt.s32.totalorder %s1899_s7, 5 }
  0x29   : > { %p2084_p10 = por %p233_p1, %p199_p9  ;;  %s1901_s18 = smov [#allocation7]  }
  0x2a   : > { %s2679_s15 = scalar_select %p2076_p5, 1, 0 }
  0x2b   : > { %s2681_s12 = scalar_select %p2084_p10, 1, 0 }
  0x2c   : > { %2680 = sst [smem:[#allocation29_spill]] %s2679_s15  ;;  %p2088_p11 = pnand %p1326_p4, %p240_p2 }
  0x2d   : > { %2682 = sst [smem:[#allocation30_spill]] %s2681_s12  ;;  %s254_s8 = sshll.u32 %s1901_s18, 4  ;;  %s255_s8 = int_to_ptr.vmem [resolvable:$true] %s254_s8 }
  0x2e   : > { %s2683_s16 = scalar_select %p2088_p11, 1, 0 }
  0x2f   : > { %p1564_p13 = pneg %p2088_p11  ;;  %s1902_s19 = smov [#allocation9]  }
  0x30   : > { %s269_s11 = sshll.u32 %s1902_s19, 4  ;;  %s1730_s24 = scalar_lea.vmem %s255_s8, 2048  ;;  %s270_s11 = int_to_ptr.vmem [resolvable:$true] %s269_s11 }
  0x31   : > { %p2096_p8 = pnand %p1564_p13, %p2027_p6  ;;  %p1731_p0 = scmp.ne.s32.totalorder %s255_s8, %s1730_s24 }
  0x32   : > { %p1738_p2 = scmp.lt.s32.totalorder %s255_s8, %s255_s8  ;;  %p1739_p10 = scmp.lt.s32.totalorder %s1730_s24, %s1730_s24 }
  0x33   : > { %p1721_p9 = pneg %p2096_p8 }
  0x34   : > { %p1740_p5 = por %p1739_p10, %p1738_p2 }
  0x35   : > { %p1733_p1 = pnand %p1731_p0, %p1721_p9 }
  0x37   : > { %p1734_p4 = pneg %p1733_p1 }
  0x39   : > { %p1741_p13 = pnand %p1740_p5, %p1734_p4 }
  0x3b   : > { %1744 = shalt.err (!%p1741_p13)
}
  0x3c   : > { %s1903_s18 = smov 128   ;;  %s1904_s10 = smov 8  }
  0x3d   : > { %s2685_s1 = sld [smem:[#allocation31_spill]]  ;;  %s1756_s21 = scalar_lea.vmem %s270_s11, 2048 }
  0x3e   : > { %p1757_p6 = scmp.ne.s32.totalorder %s270_s11, %s1756_s21  ;;  %p1764_p7 = scmp.lt.s32.totalorder %s270_s11, %s270_s11 }
  0x3f   : > { %p1765_p11 = scmp.lt.s32.totalorder %s1756_s21, %s1756_s21 }
  0x40   : > { %p1759_p0 = pnand %p1757_p6, %p1721_p9 }
  0x41   : > { %p1766_p10 = por %p1765_p11, %p1764_p7 }
  0x42   : > { %p1760_p1 = pneg %p1759_p0 }
  0x43   : > { %1567 = dma.hbm_to_vmem [thread:$0]  (!%p2096_p8), %s2685_s1, 2048, %s255_s8, [#allocation8], %s1903_s18, %s1903_s18, %s1904_s10  }
  0x44   : > { %p1767_p5 = pnand %p1766_p10, %p1760_p1 }
  0x46   : > { %1770 = shalt.err (!%p1767_p5)
}
  0x47   : > { %1570 = dma.hbm_to_vmem [thread:$0]  (!%p2096_p8), %s2646_s2, 2048, %s270_s11, [#allocation8], %s1903_s18, %s1903_s18, %s1904_s10  }
  0x48   : > { %p1331_p4 = scmp.ge.s32.totalorder %s1899_s7, 4 }
  0x49   : > { %s295_s12 = sand.u32 (!%p1331_p4), 1, %s1879_s26   ;;  %s1358_s8 = sshll.u32 (!%p1331_p4), %s1895_s30, 11 }
  0x4a   : > { %291 = sbr.rel (%p1331_p4) target bundleno = 105 (0x69), region = 32  ;;  %s1332_s19 = sshll.u32 (!%p1331_p4), %s295_s12, 7 }
  0x4b   : > { %s305_s28 = scalar_lea.hbm (!%p1331_p4), %s2644_s0, %s1358_s8  ;;  %s299_s3 = scalar_lea.vmem (!%p1331_p4), [#allocation4], %s1332_s19 }
  0x4c   : > { %s306_s4 = sshll.u32 (!%p1331_p4), %s299_s3, 4  ;;  %s296_s9 = scalar_lea.sflag (!%p1331_p4), [#allocation5], %s295_s12  ;;  %s307_s4 = int_to_ptr.vmem [resolvable:$true] %s306_s4 }
  0x4d   : > { %s1783_s27 = scalar_lea.vmem (!%p1331_p4), %s307_s4, 2048  ;;  %s1905_s10 = smov (!%p1331_p4), [#allocation4]  }
  0x4e   : > { %p1784_p6 = scmp.ne.s32.totalorder (!%p1331_p4), %s307_s4, %s1783_s27  ;;  %s1787_s11 = sshll.u32 (!%p1331_p4), %s1905_s10, 4  ;;  %s1788_s11 = int_to_ptr.vmem [resolvable:$false] %s1787_s11 }
  0x4f   : > { %s1789_s15 = scalar_lea.vmem %s1788_s11, 4096  ;;  %p1790_p8 = scmp.lt.s32.totalorder %s307_s4, %s1788_s11 }
  0x50   : > { %p1785_p7 = pnand %p1784_p6, %p2022_p3  ;;  %p1791_p9 = scmp.lt.s32.totalorder %s1789_s15, %s1783_s27 }
  0x52   : > { %p1786_p11 = pneg %p1785_p7  ;;  %p1792_p2 = por %p1791_p9, %p1790_p8 }
  0x54   : > { %p1793_p13 = pnand %p1792_p2, %p1786_p11 }
  0x56   : > { %1796 = shalt.err (!%p1793_p13)
}
  0x57   : > { %s1906_s1 = smov 128   ;;  %s1907_s18 = smov 8  }
  0x58   : > { %1541 = dma.hbm_to_vmem [thread:$0]  (%p2022_p3), %s305_s28, 2048, %s307_s4, %s296_s9, %s1906_s1, %s1906_s1, %s1907_s18  }
  0x59   : > { %s316_s3 = sand.u32 1, %s1867_s23   ;;  %s1337_s24 = sshll.u32 %s1895_s30, 4 }
  0x5a   : > { %s1335_s12 = sshll.u32 %s316_s3, 8  ;;  %s1359_s27 = sshll.u32 %s1891_s29, 6 }
  0x5b   : > { %s328_s8 = sadd.s32 %s1359_s27, %s1337_s24  ;;  %s320_s19 = scalar_lea.vmem [#allocation10], %s1335_s12 }
  0x5c   : > { %s343_s21 = sshll.u32 %s320_s19, 4  ;;  %s1339_s10 = sshll.u32 %s328_s8, 7  ;;  %s344_s21 = int_to_ptr.vmem [resolvable:$true] %s343_s21 }
  0x5d   : > { %s1542_s4 = scalar_select %p2053_p12, [#allocation0], [#allocation17] }
  0x5e   : > { %s1908_s28 = smov 4096   ;;  %s1909_s9 = smov 2048  }
  0x5f   : > { %1543 = sst [smem:[#allocation14]] (%p2053_p12), %s1908_s28  ;;  %s1910_s11 = smov 16  }
  0x60   : > { %s335_s13 = sld [smem:[%s1542_s4]]   ;;  %s1911_s15 = smov 128  }
  0x61   : > { %1544 = sst [smem:[#allocation14 + $0x1]] (%p2053_p12), %s1909_s9  ;;  %s330_s24 = scalar_lea.hbm %s2649_s5, %s1339_s10 }
  0x62   : > { %1545 = sst [smem:[#allocation14 + $0x2]] (%p2053_p12), %s1910_s11  ;;  %s1912_s12 = smov 8  }
  0x63   : > { %1546 = sst [smem:[#allocation14 + $0x3]] (%p2053_p12), %s1911_s15  ;;  %s317_s19 = scalar_lea.sflag [#allocation11], %s316_s3 }
  0x64   : > { %1547 = sst [smem:[#allocation14 + $0x4]] (%p2053_p12), %s1911_s15  ;;  %s1913_s4 = smov 131072  }
  0x65   : > { %1548 = sst [smem:[#allocation14 + $0x5]] (%p2053_p12), %s1912_s12 }
  0x66   : > { %s1340_s27 = sshll.u32 %s335_s13, 26 }
  0x67   : > { %s1341_s8 = sadd.s32 134217728, %s1340_s27 }
  0x68   : > { %1549 = dma.general (%p2053_p12), %s330_s24, 4096, %s344_s21, %s317_s19, %s1913_s4, [#allocation14], %s1341_s8, 0  }
  0x69 PF: > { %p2686_p3 = scmp.ne.s32.totalorder %s2683_s16, 0 }
  0x6a   : > { %s370_s28 = sand.u32 (!%p2686_p3), 1, %s1875_s25   ;;  %p2687_p0 = scmp.ne.s32.totalorder (!%p2686_p3), %s2674_s17, 0 }
  0x6b   : > { %368 = sbr.rel (%p2686_p3) target bundleno = 458 (0x1ca), region = 44  ;;  %s1343_s9 = sshll.u32 (!%p2686_p3), %s370_s28, 7 }
  0x6c   : > { %s371_s10 = scalar_lea.sflag (!%p2686_p3), [#allocation5], %s370_s28  ;;  %s2153_s11 = scalar_lea.vmem (!%p2686_p3), [#allocation4], %s1343_s9 }
  0x70   : > { %1842 = dma.done.wait (%p2687_p0), %s371_s10, 2048  }
  0x71   : > { %1844 = vsyncadd (%p2687_p0), %s371_s10, 4294965248  ;;  %p2688_p1 = scmp.ne.s32.totalorder %s2672_s14, 0 }
  0x73   : > { %1846 = dma.done.wait (%p2688_p1), [#allocation8], 4096  }
  0x74   : > { %1848 = vsyncadd (%p2688_p1), [#allocation8], 4294963200  ;;  %s2164_s20 = sand.u32 1, %s1863_s22   ;;  %p2689_p12 = scmp.ne.s32.totalorder %s2678_s6, 0 }
  0x75   : > { %s1346_s16 = sshll.u32 %s2164_s20, 8  ;;  %s388_s3 = scalar_lea.sflag [#allocation11], %s2164_s20 }
  0x76   : > { %s2168_s21 = scalar_lea.vmem [#allocation10], %s1346_s16 }
  0x77   : > { %1850 = dma.done.wait (%p2689_p12), %s388_s3, 4096  }
  0x78   : > { %1852 = vsyncadd (%p2689_p12), %s388_s3, 4294963200  ;;  %s2174_s17 = scalar_lea.vmem [#allocation12], %s1346_s16  ;;  %s2690_s13 = sld [smem:[#allocation23_spill]] }
  0x7e   : > { %p1348_p10 = scmp.ne.s32.totalorder %s2690_s13, 0 }
  0x7f   : > { %s2691_s15 = sld [smem:[#allocation33_spill]] (!%p1348_p10) }
  0x80   : > { %445 = sbr.rel (%p1348_p10) target bundleno = 410 (0x19a), region = 64  ;;  %s2692_s24 = sld [smem:[#allocation32_spill]] (!%p1348_p10) }
  0x85   : > { %v509_v0 = vld [vmem:[#allocation9 + $0x78] sm:$0xff]  ;;  %v508_v1 = vld [vmem:[#allocation9 + $0x70] sm:$0xff]  ;;  %v507_v2 = vld [vmem:[#allocation9 + $0x68] sm:$0xff] }
  0x86   : > { %1481 = vmatprep.subr.mxu1 %v509_v0  ;;  %v477_v3 = vld [vmem:[#allocation7 + $0x78] sm:$0xff]  ;;  %v476_v4 = vld [vmem:[#allocation7 + $0x70] sm:$0xff]  ;;  %v506_v5 = vld [vmem:[#allocation9 + $0x60] sm:$0xff] }
  0x87   : > { %1482 = vmatpush3.msra.mxu1 %v509_v0  ;;  %1425 = vmatprep.subr.mxu0 %v477_v3  ;;  %v475_v6 = vld [vmem:[#allocation7 + $0x68] sm:$0xff]  ;;  %v505_v7 = vld [vmem:[#allocation9 + $0x58] sm:$0xff]  ;;  %v474_v8 = vld [vmem:[#allocation7 + $0x60] sm:$0xff] }
  0x88   : > { %1483 = vmatprep.subr.mxu1 %v508_v1  ;;  %1426 = vmatpush3.msra.mxu0 %v477_v3  ;;  %v504_v9 = vld [vmem:[#allocation9 + $0x50] sm:$0xff]  ;;  %v473_v10 = vld [vmem:[#allocation7 + $0x58] sm:$0xff]  ;;  %v503_v11 = vld [vmem:[#allocation9 + $0x48] sm:$0xff] }
  0x89   : > { %1484 = vmatpush3.msra.mxu1 %v508_v1  ;;  %1427 = vmatprep.subr.mxu0 %v476_v4  ;;  %v472_v12 = vld [vmem:[#allocation7 + $0x50] sm:$0xff]  ;;  %v502_v13 = vld [vmem:[#allocation9 + $0x40] sm:$0xff]  ;;  %v471_v14 = vld [vmem:[#allocation7 + $0x48] sm:$0xff] }
  0x8a   : > { %1485 = vmatprep.subr.mxu1 %v507_v2  ;;  %1428 = vmatpush3.msra.mxu0 %v476_v4  ;;  %v2178_v15 = vld [vmem:[%s2153_s11] sm:$0xff]  ;;  %v501_v16 = vld [vmem:[#allocation9 + $0x38] sm:$0xff]  ;;  %v500_v19 = vld [vmem:[#allocation9 + $0x30] sm:$0xff] }
  0x8b   : > { %1486 = vmatpush3.msra.mxu1 %v507_v2  ;;  %1429 = vmatprep.subr.mxu0 %v475_v6  ;;  %v470_v17 = vld [vmem:[#allocation7 + $0x40] sm:$0xff]  ;;  %v478_v18 = vmul.f32 %v2178_v15, %v2178_v15  ;;  %v469_v20 = vld [vmem:[#allocation7 + $0x38] sm:$0xff]  ;;  %v499_v21 = vld [vmem:[#allocation9 + $0x28] sm:$0xff] }
  0x8c   : > { %1487 = vmatprep.subr.mxu1 %v506_v5  ;;  %1430 = vmatpush3.msra.mxu0 %v475_v6  ;;  %v468_v22 = vld [vmem:[#allocation7 + $0x30] sm:$0xff]  ;;  %v498_v23 = vld [vmem:[#allocation9 + $0x20] sm:$0xff]  ;;  %v467_v24 = vld [vmem:[#allocation7 + $0x28] sm:$0xff] }
  0x8d   : > { %1488 = vmatpush3.msra.mxu1 %v506_v5  ;;  %1431 = vmatprep.subr.mxu0 %v474_v8  ;;  %v497_v25 = vld [vmem:[#allocation9 + $0x18] sm:$0xff]  ;;  %v466_v26 = vld [vmem:[#allocation7 + $0x20] sm:$0xff]  ;;  %v496_v27 = vld [vmem:[#allocation9 + $0x10] sm:$0xff] }
  0x8e   : > { %1489 = vmatprep.subr.mxu1 %v505_v7  ;;  %1432 = vmatpush3.msra.mxu0 %v474_v8  ;;  %v465_v28 = vld [vmem:[#allocation7 + $0x18] sm:$0xff]  ;;  %v495_v29 = vld [vmem:[#allocation9 + $0x8] sm:$0xff]  ;;  %v448_v31 = vld [vmem:[%s2153_s11 + $0x10] sm:$0xff] }
  0x8f   : > { %1490 = vmatpush3.msra.mxu1 %v505_v7  ;;  %1433 = vmatprep.subr.mxu0 %v473_v10  ;;  %v447_v30 = vld [vmem:[%s2153_s11 + $0x8] sm:$0xff]  ;;  %v464_v32 = vld [vmem:[#allocation7 + $0x10] sm:$0xff]  ;;  %v494_v33 = vld [vmem:[#allocation9] sm:$0xff]  ;;  %v480_v36 = vmul.f32 %v448_v31, %v448_v31 }
  0x90   : > { %1491 = vmatprep.subr.mxu1 %v504_v9  ;;  %1434 = vmatpush3.msra.mxu0 %v473_v10  ;;  %v479_v34 = vmul.f32 %v447_v30, %v447_v30  ;;  %v463_v35 = vld [vmem:[#allocation7 + $0x8] sm:$0xff]  ;;  %v449_v37 = vld [vmem:[%s2153_s11 + $0x18] sm:$0xff]  ;;  %v450_v38 = vld [vmem:[%s2153_s11 + $0x20] sm:$0xff] }
  0x91   : > { %1492 = vmatpush3.msra.mxu1 %v504_v9  ;;  %1435 = vmatprep.subr.mxu0 %v472_v12  ;;  %v462_v39 = vld [vmem:[#allocation7] sm:$0xff]  ;;  %v481_v40 = vmul.f32 %v449_v37, %v449_v37  ;;  %v482_v41 = vmul.f32 %v450_v38, %v450_v38  ;;  %v451_v42 = vld [vmem:[%s2153_s11 + $0x28] sm:$0xff]  ;;  %v452_v43 = vld [vmem:[%s2153_s11 + $0x30] sm:$0xff] }
  0x92   : > { %1493 = vmatprep.subr.mxu1 %v503_v11  ;;  %1436 = vmatpush3.msra.mxu0 %v472_v12  ;;  %v483_v44 = vmul.f32 %v451_v42, %v451_v42  ;;  %v484_v45 = vmul.f32 %v452_v43, %v452_v43  ;;  %v453_v46 = vld [vmem:[%s2153_s11 + $0x38] sm:$0xff]  ;;  %v454_v47 = vld [vmem:[%s2153_s11 + $0x40] sm:$0xff]  ;;  %v455_v50 = vld [vmem:[%s2153_s11 + $0x48] sm:$0xff] }
  0x93   : > { %1494 = vmatpush3.msra.mxu1 %v503_v11  ;;  %1437 = vmatprep.subr.mxu0 %v471_v14  ;;  %v485_v48 = vmul.f32 %v453_v46, %v453_v46  ;;  %v486_v49 = vmul.f32 %v454_v47, %v454_v47  ;;  %v456_v51 = vld [vmem:[%s2153_s11 + $0x50] sm:$0xff]  ;;  %v487_v52 = vmul.f32 %v455_v50, %v455_v50  ;;  %v457_v54 = vld [vmem:[%s2153_s11 + $0x58] sm:$0xff]  ;;  %v458_v55 = vld [vmem:[%s2153_s11 + $0x60] sm:$0xff] }
  0x94   : > { %1495 = vmatprep.subr.mxu1 %v502_v13  ;;  %1438 = vmatpush3.msra.mxu0 %v471_v14  ;;  %v488_v53 = vmul.f32 %v456_v51, %v456_v51  ;;  %v489_v56 = vmul.f32 %v457_v54, %v457_v54  ;;  %v490_v57 = vmul.f32 %v458_v55, %v458_v55  ;;  %v459_v58 = vld [vmem:[%s2153_s11 + $0x68] sm:$0xff]  ;;  %v460_v59 = vld [vmem:[%s2153_s11 + $0x70] sm:$0xff]  ;;  %v461_v62 = vld [vmem:[%s2153_s11 + $0x78] sm:$0xff] }
  0x95   : > { %1496 = vmatpush3.msra.mxu1 %v502_v13  ;;  %1439 = vmatprep.subr.mxu0 %v470_v17  ;;  %v491_v60 = vmul.f32 %v459_v58, %v459_v58  ;;  %v492_v61 = vmul.f32 %v460_v59, %v460_v59  ;;  %v493_v63 = vmul.f32 %v461_v62, %v461_v62  ;;  %v2201_v0 = vld [vmem:[%s2691_s15] ss:$0 sm:$0xff] }
  0x96   : > { %1497 = vmatprep.subr.mxu1 %v501_v16  ;;  %1440 = vmatpush3.msra.mxu0 %v470_v17  ;;  %v2209_v3 = vld [vmem:[%s2692_s24] ss:$0 sm:$0xff] }
  0x97   : > { %1498 = vmatpush3.msra.mxu1 %v501_v16  ;;  %1513 = vmatprep.mubr.f32.mxu1 %v478_v18 }
  0x98   : > { %1499 = vmatprep.subr.mxu1 %v500_v19  ;;  %1441 = vmatprep.subr.mxu0 %v469_v20 }
  0x99   : > { %1500 = vmatpush3.msra.mxu1 %v500_v19  ;;  %1442 = vmatpush3.msra.mxu0 %v469_v20 }
  0x9a   : > { %1501 = vmatprep.subr.mxu1 %v499_v21  ;;  %1443 = vmatprep.subr.mxu0 %v468_v22 }
  0x9b   : > { %1502 = vmatpush3.msra.mxu1 %v499_v21  ;;  %1444 = vmatpush3.msra.mxu0 %v468_v22 }
  0x9c   : > { %1503 = vmatprep.subr.mxu1 %v498_v23  ;;  %1445 = vmatprep.subr.mxu0 %v467_v24 }
  0x9d   : > { %1504 = vmatpush3.msra.mxu1 %v498_v23  ;;  %1446 = vmatpush3.msra.mxu0 %v467_v24 }
  0x9e   : > { %1505 = vmatprep.subr.mxu1 %v497_v25  ;;  %1447 = vmatprep.subr.mxu0 %v466_v26 }
  0x9f   : > { %1506 = vmatpush3.msra.mxu1 %v497_v25  ;;  %1448 = vmatpush3.msra.mxu0 %v466_v26 }
  0xa0   : > { %1507 = vmatprep.subr.mxu1 %v496_v27  ;;  %1449 = vmatprep.subr.mxu0 %v465_v28 }
  0xa1   : > { %1508 = vmatpush3.msra.mxu1 %v496_v27  ;;  %1450 = vmatpush3.msra.mxu0 %v465_v28 }
  0xa2   : > { %1509 = vmatprep.subr.mxu1 %v495_v29  ;;  %1451 = vmatprep.subr.mxu0 %v464_v32 }
  0xa3   : > { %1510 = vmatpush3.msra.mxu1 %v495_v29  ;;  %1452 = vmatpush3.msra.mxu0 %v464_v32 }
  0xa4   : > { %1511 = vmatprep.subr.mxu1 %v494_v33  ;;  %1453 = vmatprep.subr.mxu0 %v463_v35 }
  0xa5   : > { %1512 = vmatpush3.msra.mxu1 %v494_v33  ;;  %1454 = vmatpush3.msra.mxu0 %v463_v35 }
  0xa6   : > { %1514 = vmatmul.mubr.f32.vlgmr.msra.gmra.mxu1 %v479_v34  ;;  %1455 = vmatprep.subr.mxu0 %v462_v39 }
  0xa7   : > { %1516 = vmatprep.mubr.f32.mxu1 %v480_v36  ;;  %1456 = vmatpush3.msra.mxu0 %v462_v39 }
  0xa8   : > { %1457 = vmatprep.mubr.f32.mxu0 %v2178_v15 }
  0xa9   : > { %1458 = vmatmul.mubr.f32.vlgmr.msra.gmra.mxu0 %v447_v30 }
  0xaa   : > { %1517 = vmatmul.mubr.f32.gmra.mxu1 %v481_v40  ;;  %1460 = vmatprep.mubr.f32.mxu0 %v448_v31 }
  0xab   : > { %1519 = vmatprep.mubr.f32.mxu1 %v482_v41 }
  0xad   : > { %1461 = vmatmul.mubr.f32.gmra.mxu0 %v449_v37 }
  0xae   : > { %1520 = vmatmul.mubr.f32.gmra.mxu1 %v483_v44  ;;  %1463 = vmatprep.mubr.f32.mxu0 %v450_v38 }
  0xaf   : > { %1522 = vmatprep.mubr.f32.mxu1 %v484_v45 }
  0xb1   : > { %1464 = vmatmul.mubr.f32.gmra.mxu0 %v451_v42 }
  0xb2   : > { %1523 = vmatmul.mubr.f32.gmra.mxu1 %v485_v48  ;;  %1466 = vmatprep.mubr.f32.mxu0 %v452_v43 }
  0xb3   : > { %1525 = vmatprep.mubr.f32.mxu1 %v486_v49 }
  0xb5   : > { %1467 = vmatmul.mubr.f32.gmra.mxu0 %v453_v46 }
  0xb6   : > { %1526 = vmatmul.mubr.f32.gmra.mxu1 %v487_v52  ;;  %1469 = vmatprep.mubr.f32.mxu0 %v454_v47 }
  0xb7   : > { %1528 = vmatprep.mubr.f32.mxu1 %v488_v53 }
  0xb9   : > { %1470 = vmatmul.mubr.f32.gmra.mxu0 %v455_v50 }
  0xba   : > { %1529 = vmatmul.mubr.f32.gmra.mxu1 %v489_v56  ;;  %1472 = vmatprep.mubr.f32.mxu0 %v456_v51 }
  0xbb   : > { %1531 = vmatprep.mubr.f32.mxu1 %v490_v57 }
  0xbd   : > { %1473 = vmatmul.mubr.f32.gmra.mxu0 %v457_v54 }
  0xbe   : > { %1532 = vmatmul.mubr.f32.gmra.mxu1 %v491_v60  ;;  %1475 = vmatprep.mubr.f32.mxu0 %v458_v55 }
  0xbf   : > { %1534 = vmatprep.mubr.f32.mxu1 %v492_v61 }
  0xc1   : > { %1476 = vmatmul.mubr.f32.gmra.mxu0 %v459_v58 }
  0xc2   : > { %1535 = vmatmul.mubr.f32.gmra.mxu1 %v493_v63  ;;  %1478 = vmatprep.mubr.f32.mxu0 %v460_v59 }
  0xc5   : > { %1479 = vmatmul.mubr.f32.gmra.mxu0 %v461_v62 }
 0x166   : > { %v1515_v1 = vpop.f32.mrf.mxu1 }
 0x167   : > { %v2204_v2 = vadd.f32 %v1515_v1, %v2201_v0 }
 0x168   : > { %v735_v4 = vpop.f32.mrf.mxu1 }
 0x169   : > { %1687 = vrsqrt.f32 %v2204_v2  ;;  %v1459_v5 = vpop.f32.mrf.mxu0  ;;  %v2213_v6 = vadd.f32 %v2201_v0, %v735_v4  ;;  %vm839_vm0 = vcmp.eq.f32.partialorder %v2204_v2, inf  ;;  %vm841_vm1 = vcmp.eq.f32.partialorder %v2204_v2, 0.0 }
 0x16a   : > { %v1518_v7 = vpop.f32.mrf.mxu1  ;;  %v589_v8 = vadd.f32 %v1459_v5, %v2209_v3  ;;  %v842_v35 = vand.u32 2147483648, %v2204_v2 }
 0x16b   : > { %v2217_v9 = vadd.f32 %v1518_v7, %v2201_v0  ;;  %v583_v10 = vpop.f32.mrf.mxu0  ;;  %1689 = vrsqrt.f32 %v2213_v6  ;;  %vm832_vm2 = vcmp.eq.f32.partialorder %v2213_v6, inf  ;;  %vm834_vm3 = vcmp.eq.f32.partialorder %v2213_v6, 0.0 }
 0x16c   : > { %v745_v11 = vpop.f32.mrf.mxu1  ;;  %815 = vst [vmem:[#allocation2] sm:$0xff] %v589_v8  ;;  %v584_v15 = vadd.f32 %v2209_v3, %v583_v10  ;;  %v835_v38 = vand.u32 2147483648, %v2213_v6 }
 0x16d   : > { %1691 = vrsqrt.f32 %v2217_v9  ;;  %v1462_v12 = vpop.f32.mrf.mxu0  ;;  %v2222_v13 = vadd.f32 %v2201_v0, %v745_v11  ;;  %vm853_vm4 = vcmp.eq.f32.partialorder %v2217_v9, inf  ;;  %vm855_vm5 = vcmp.eq.f32.partialorder %v2217_v9, 0.0 }
 0x16e   : > { %v1521_v14 = vpop.f32.mrf.mxu1  ;;  %v599_v16 = vadd.f32 %v1462_v12, %v2209_v3  ;;  %814 = vst [vmem:[#allocation2 + $0x30] sm:$0xff] %v584_v15  ;;  %v856_v46 = vand.u32 2147483648, %v2217_v9 }
 0x16f   : > { %v2227_v17 = vadd.f32 %v1521_v14, %v2201_v0  ;;  %v593_v18 = vpop.f32.mrf.mxu0  ;;  %1693 = vrsqrt.f32 %v2222_v13  ;;  %vm846_vm6 = vcmp.eq.f32.partialorder %v2222_v13, inf  ;;  %vm848_vm7 = vcmp.eq.f32.partialorder %v2222_v13, 0.0 }
 0x170   : > { %v755_v19 = vpop.f32.mrf.mxu1  ;;  %817 = vst [vmem:[#allocation2 + $0x18] sm:$0xff] %v599_v16  ;;  %v594_v23 = vadd.f32 %v2209_v3, %v593_v18  ;;  %v849_v59 = vand.u32 2147483648, %v2222_v13 }
 0x171   : > { %1695 = vrsqrt.f32 %v2227_v17  ;;  %v1465_v20 = vpop.f32.mrf.mxu0  ;;  %v2232_v21 = vadd.f32 %v2201_v0, %v755_v19  ;;  %vm867_vm8 = vcmp.eq.f32.partialorder %v2227_v17, inf  ;;  %vm869_vm9 = vcmp.eq.f32.partialorder %v2227_v17, 0.0 }
 0x172   : > { %v1524_v22 = vpop.f32.mrf.mxu1  ;;  %v609_v24 = vadd.f32 %v1465_v20, %v2209_v3  ;;  %816 = vst [vmem:[#allocation2 + $0x58] sm:$0xff] %v594_v23  ;;  %v870_v4 = vand.u32 2147483648, %v2227_v17 }
 0x173   : > { %v2237_v25 = vadd.f32 %v1524_v22, %v2201_v0  ;;  %v603_v26 = vpop.f32.mrf.mxu0  ;;  %1697 = vrsqrt.f32 %v2232_v21  ;;  %vm860_vm10 = vcmp.eq.f32.partialorder %v2232_v21, inf  ;;  %vm862_vm11 = vcmp.eq.f32.partialorder %v2232_v21, 0.0 }
 0x174   : > { %v765_v27 = vpop.f32.mrf.mxu1  ;;  %819 = vst [vmem:[#allocation2 + $0x68] sm:$0xff] %v609_v24  ;;  %v604_v32 = vadd.f32 %v2209_v3, %v603_v26 }
 0x175   : > { %1699 = vrsqrt.f32 %v2237_v25  ;;  %v1468_v28 = vpop.f32.mrf.mxu0  ;;  %v2243_v30 = vadd.f32 %v2201_v0, %v765_v27  ;;  %vm881_vm12 = vcmp.eq.f32.partialorder %v2237_v25, inf  ;;  %vm883_vm13 = vcmp.eq.f32.partialorder %v2237_v25, 0.0 }
 0x176   : > { %v1688_v29 = vpop.eup %1687  ;;  %v1527_v31 = vpop.f32.mrf.mxu1  ;;  %v619_v33 = vadd.f32 %v1468_v28, %v2209_v3  ;;  %818 = vst [vmem:[#allocation2 + $0x50] sm:$0xff] %v604_v32  ;;  %v884_v27 = vand.u32 2147483648, %v2237_v25 }
 0x177   : > { %v838_v34 = vmul.f32 %v1688_v29, %v2204_v2  ;;  %v2251_v36 = vadd.f32 %v1527_v31, %v2201_v0  ;;  %v613_v37 = vpop.f32.mrf.mxu0  ;;  %1701 = vrsqrt.f32 %v2243_v30  ;;  %vm874_vm14 = vcmp.eq.f32.partialorder %v2243_v30, inf }
 0x178   : > { %v775_v39 = vpop.f32.mrf.mxu1  ;;  %821 = vst [vmem:[#allocation2 + $0x48] sm:$0xff] %v619_v33  ;;  %v1690_v40 = vpop.eup %1689  ;;  %v614_v51 = vadd.f32 %v2209_v3, %v613_v37  ;;  %vm876_vm15 = vcmp.eq.f32.partialorder %v2243_v30, 0.0 }
 0x179   : > { %v840_v41 = vsel %vm839_vm0, %v2204_v2, %v838_v34  ;;  %1703 = vrsqrt.f32 %v2251_v36  ;;  %v1471_v42 = vpop.f32.mrf.mxu0  ;;  %v831_v45 = vmul.f32 %v1690_v40, %v2213_v6  ;;  %v2268_v47 = vadd.f32 %v2201_v0, %v775_v39 }
 0x17a   : > { %v1692_v43 = vpop.eup %1691  ;;  %v843_v44 = vsel %vm841_vm1, %v842_v35, %v840_v41  ;;  %v1530_v48 = vpop.f32.mrf.mxu1  ;;  %v629_v52 = vadd.f32 %v1471_v42, %v2209_v3  ;;  %820 = vst [vmem:[#allocation2 + $0x8] sm:$0xff] %v614_v51  ;;  %vm895_vm0 = vcmp.eq.f32.partialorder %v2251_v36, inf  ;;  %vm897_vm1 = vcmp.eq.f32.partialorder %v2251_v36, 0.0 }
 0x17b   : > { %943 = vst [vmem:[#allocation3 + $0x68] sm:$0xff] %v843_v44  ;;  %v852_v49 = vmul.f32 %v1692_v43, %v2217_v9  ;;  %v2272_v50 = vadd.f32 %v1530_v48, %v2201_v0  ;;  %v623_v53 = vpop.f32.mrf.mxu0  ;;  %v833_v54 = vsel %vm832_vm2, %v2213_v6, %v831_v45  ;;  %1705 = vrsqrt.f32 %v2268_v47 }
 0x17c   : > { %v785_v55 = vpop.f32.mrf.mxu1  ;;  %v1694_v56 = vpop.eup %1693  ;;  %v836_v57 = vsel %vm834_vm3, %v835_v38, %v833_v54  ;;  %823 = vst [vmem:[#allocation2 + $0x20] sm:$0xff] %v629_v52  ;;  %v624_v10 = vadd.f32 %v2209_v3, %v623_v53  ;;  %vm888_vm2 = vcmp.eq.f32.partialorder %v2268_v47, inf  ;;  %vm890_vm3 = vcmp.eq.f32.partialorder %v2268_v47, 0.0 }
 0x17d   : > { %v854_v58 = vsel %vm853_vm4, %v2217_v9, %v852_v49  ;;  %1707 = vrsqrt.f32 %v2272_v50  ;;  %v1474_v60 = vpop.f32.mrf.mxu0  ;;  %942 = vst [vmem:[#allocation3 + $0x28] sm:$0xff] %v836_v57  ;;  %v845_v63 = vmul.f32 %v1694_v56, %v2222_v13  ;;  %v2297_v5 = vadd.f32 %v2201_v0, %v785_v55 }
 0x17e   : > { %v1696_v61 = vpop.eup %1695  ;;  %v857_v62 = vsel %vm855_vm5, %v856_v46, %v854_v58  ;;  %v1533_v1 = vpop.f32.mrf.mxu1  ;;  %v639_v11 = vadd.f32 %v1474_v60, %v2209_v3  ;;  %822 = vst [vmem:[#allocation2 + $0x40] sm:$0xff] %v624_v10  ;;  %vm909_vm4 = vcmp.eq.f32.partialorder %v2272_v50, inf  ;;  %v912_v56 = vand.u32 2147483648, %v2272_v50 }
 0x17f   : > { %945 = vst [vmem:[#allocation3 + $0x40] sm:$0xff] %v857_v62  ;;  %v866_v2 = vmul.f32 %v1696_v61, %v2227_v17  ;;  %v2300_v6 = vadd.f32 %v1533_v1, %v2201_v0  ;;  %v633_v7 = vpop.f32.mrf.mxu0  ;;  %v847_v8 = vsel %vm846_vm6, %v2222_v13, %v845_v63  ;;  %1709 = vrsqrt.f32 %v2297_v5 }
 0x180   : > { %v795_v9 = vpop.f32.mrf.mxu1  ;;  %v634_v12 = vadd.f32 %v2209_v3, %v633_v7  ;;  %v1698_v14 = vpop.eup %1697  ;;  %v850_v15 = vsel %vm848_vm7, %v849_v59, %v847_v8  ;;  %v863_v13 = vand.u32 2147483648, %v2232_v21  ;;  %825 = vst [vmem:[#allocation2 + $0x38] sm:$0xff] %v639_v11  ;;  %vm911_vm5 = vcmp.eq.f32.partialorder %v2272_v50, 0.0 }
 0x181   : > { %v868_v16 = vsel %vm867_vm8, %v2227_v17, %v866_v2  ;;  %v1477_v18 = vpop.f32.mrf.mxu0  ;;  %944 = vst [vmem:[#allocation3 + $0x10] sm:$0xff] %v850_v15  ;;  %v859_v22 = vmul.f32 %v1698_v14, %v2232_v21  ;;  %1711 = vrsqrt.f32 %v2300_v6  ;;  %v2329_v28 = vadd.f32 %v2201_v0, %v795_v9 }
 0x182   : > { %v1700_v19 = vpop.eup %1699  ;;  %v871_v20 = vsel %vm869_vm9, %v870_v4, %v868_v16  ;;  %v1536_v23 = vpop.f32.mrf.mxu1  ;;  %824 = vst [vmem:[#allocation2 + $0x10] sm:$0xff] %v634_v12  ;;  %v649_v37 = vadd.f32 %v1477_v18, %v2209_v3  ;;  %vm902_vm6 = vcmp.eq.f32.partialorder %v2297_v5, inf  ;;  %vm904_vm7 = vcmp.eq.f32.partialorder %v2297_v5, 0.0 }
 0x183   : > { %947 = vst [vmem:[#allocation3 + $0x30] sm:$0xff] %v871_v20  ;;  %v880_v24 = vmul.f32 %v1700_v19, %v2237_v25  ;;  %v643_v17 = vpop.f32.mrf.mxu0  ;;  %v861_v26 = vsel %vm860_vm10, %v2232_v21, %v859_v22  ;;  %v2332_v29 = vadd.f32 %v1536_v23, %v2201_v0  ;;  %1713 = vrsqrt.f32 %v2329_v28 }
 0x184   : > { %v805_v31 = vpop.f32.mrf.mxu1  ;;  %v1702_v32 = vpop.eup %1701  ;;  %v864_v33 = vsel %vm862_vm11, %v863_v13, %v861_v26  ;;  %v877_v21 = vand.u32 2147483648, %v2243_v30  ;;  %827 = vst [vmem:[#allocation2 + $0x70] sm:$0xff] %v649_v37  ;;  %v644_v53 = vadd.f32 %v2209_v3, %v643_v17  ;;  %vm923_vm8 = vcmp.eq.f32.partialorder %v2300_v6, inf }
 0x185   : > { %v882_v34 = vsel %vm881_vm12, %v2237_v25, %v880_v24  ;;  %v2338_v35 = vadd.f32 %v2201_v0, %v805_v31  ;;  %v1480_v38 = vpop.f32.mrf.mxu0  ;;  %946 = vst [vmem:[#allocation3 + $0x48] sm:$0xff] %v864_v33  ;;  %v873_v41 = vmul.f32 %v1702_v32, %v2243_v30  ;;  %1715 = vrsqrt.f32 %v2332_v29 }
 0x186   : > { %v1704_v39 = vpop.eup %1703  ;;  %v885_v40 = vsel %vm883_vm13, %v884_v27, %v882_v34  ;;  %v898_v25 = vand.u32 2147483648, %v2251_v36  ;;  %v659_v54 = vadd.f32 %v1480_v38, %v2209_v3  ;;  %826 = vst [vmem:[#allocation2 + $0x60] sm:$0xff] %v644_v53  ;;  %v926_v1 = vand.u32 2147483648, %v2300_v6 }
 0x187   : > { %949 = vst [vmem:[#allocation3 + $0x38] sm:$0xff] %v885_v40  ;;  %v894_v0 = vmul.f32 %v1704_v39, %v2251_v36  ;;  %v875_v42 = vsel %vm874_vm14, %v2243_v30, %v873_v41  ;;  %v653_v43 = vpop.f32.mrf.mxu0  ;;  %1717 = vrsqrt.f32 %v2338_v35  ;;  %v891_v30 = vand.u32 2147483648, %v2268_v47 }
 0x188   : > { %v1706_v44 = vpop.eup %1705  ;;  %v878_v45 = vsel %vm876_vm15, %v877_v21, %v875_v42  ;;  %829 = vst [vmem:[#allocation2 + $0x28] sm:$0xff] %v659_v54  ;;  %vm925_vm9 = vcmp.eq.f32.partialorder %v2300_v6, 0.0  ;;  %vm916_vm10 = vcmp.eq.f32.partialorder %v2329_v28, inf  ;;  %vm918_vm11 = vcmp.eq.f32.partialorder %v2329_v28, 0.0 }
 0x189   : > { %v896_v46 = vsel %vm895_vm0, %v2251_v36, %v894_v0  ;;  %948 = vst [vmem:[#allocation3 + $0x70] sm:$0xff] %v878_v45  ;;  %v887_v51 = vmul.f32 %v1706_v44, %v2268_v47  ;;  %v654_v36 = vadd.f32 %v2209_v3, %v653_v43  ;;  %vm937_vm12 = vcmp.eq.f32.partialorder %v2332_v29, inf }
 0x18a   : > { %v1708_v48 = vpop.eup %1707  ;;  %v899_v49 = vsel %vm897_vm1, %v898_v25, %v896_v46  ;;  %vm939_vm13 = vcmp.eq.f32.partialorder %v2332_v29, 0.0  ;;  %vm930_vm14 = vcmp.eq.f32.partialorder %v2338_v35, inf  ;;  %v933_v19 = vand.u32 2147483648, %v2338_v35 }
 0x18b   : > { %951 = vst [vmem:[#allocation3 + $0x78] sm:$0xff] %v899_v49  ;;  %v908_v52 = vmul.f32 %v1708_v48, %v2272_v50  ;;  %v889_v55 = vsel %vm888_vm2, %v2268_v47, %v887_v51  ;;  %828 = vst [vmem:[#allocation2 + $0x78] sm:$0xff] %v654_v36  ;;  %v905_v47 = vand.u32 2147483648, %v2297_v5  ;;  %vm932_vm15 = vcmp.eq.f32.partialorder %v2338_v35, 0.0 }
 0x18c   : > { %v892_v57 = vsel %vm890_vm3, %v891_v30, %v889_v55  ;;  %v1710_v59 = vpop.eup %1709 }
 0x18d   : > { %v910_v58 = vsel %vm909_vm4, %v2272_v50, %v908_v52  ;;  %950 = vst [vmem:[#allocation3 + $0x20] sm:$0xff] %v892_v57  ;;  %v901_v3 = vmul.f32 %v1710_v59, %v2297_v5 }
 0x18e   : > { %v913_v60 = vsel %vm911_vm5, %v912_v56, %v910_v58  ;;  %v1712_v61 = vpop.eup %1711 }
 0x18f   : > { %953 = vst [vmem:[#allocation3 + $0x58] sm:$0xff] %v913_v60  ;;  %v903_v62 = vsel %vm902_vm6, %v2297_v5, %v901_v3  ;;  %v922_v50 = vmul.f32 %v1712_v61, %v2300_v6  ;;  %v919_v5 = vand.u32 2147483648, %v2329_v28 }
 0x190   : > { %v906_v63 = vsel %vm904_vm7, %v905_v47, %v903_v62  ;;  %v1714_v2 = vpop.eup %1713 }
 0x191   : > { %952 = vst [vmem:[#allocation3 + $0x18] sm:$0xff] %v906_v63  ;;  %v924_v4 = vsel %vm923_vm8, %v2300_v6, %v922_v50  ;;  %v915_v9 = vmul.f32 %v1714_v2, %v2329_v28  ;;  %v940_v6 = vand.u32 2147483648, %v2332_v29 }
 0x192   : > { %v1716_v7 = vpop.eup %1715  ;;  %v927_v8 = vsel %vm925_vm9, %v926_v1, %v924_v4 }
 0x193   : > { %955 = vst [vmem:[#allocation3 + $0x8] sm:$0xff] %v927_v8  ;;  %v936_v10 = vmul.f32 %v1716_v7, %v2332_v29  ;;  %v917_v12 = vsel %vm916_vm10, %v2329_v28, %v915_v9 }
 0x194   : > { %v1718_v11 = vpop.eup %1717  ;;  %v920_v14 = vsel %vm918_vm11, %v919_v5, %v917_v12 }
 0x195   : > { %v938_v15 = vsel %vm937_vm12, %v2332_v29, %v936_v10  ;;  %v929_v16 = vmul.f32 %v1718_v11, %v2338_v35  ;;  %954 = vst [vmem:[#allocation3] sm:$0xff] %v920_v14 }
 0x196   : > { %v941_v18 = vsel %vm939_vm13, %v940_v6, %v938_v15 }
 0x197   : > { %957 = vst [vmem:[#allocation3 + $0x50] sm:$0xff] %v941_v18  ;;  %v931_v20 = vsel %vm930_vm14, %v2338_v35, %v929_v16 }
 0x198   : > { %v934_v22 = vsel %vm932_vm15, %v933_v19, %v931_v20 }
 0x199   : > { %956 = vst [vmem:[#allocation3 + $0x60] sm:$0xff] %v934_v22 }
 0x19a PF: > { %v958_v13 = vld [vmem:[%s2168_s21] sm:$0xff]  ;;  %v2395_v23 = vld [vmem:[#allocation2 + $0x30] sm:$0xff]  ;;  %v2397_v24 = vld [vmem:[#allocation3 + $0x28] sm:$0xff]  ;;  %s1119_s12 = scalar_lea.sflag [#allocation6], %s2164_s20 }
 0x19b   : > { %v1022_v17 = vmul.f32 %v2397_v24, %v958_v13  ;;  %v959_v26 = vld [vmem:[%s2168_s21 + $0x8] sm:$0xff]  ;;  %v2401_v27 = vld [vmem:[#allocation2] sm:$0xff]  ;;  %v960_v31 = vld [vmem:[%s2168_s21 + $0x10] sm:$0xff] }
 0x19c   : > { %v2403_v28 = vld [vmem:[#allocation3 + $0x68] sm:$0xff]  ;;  %v2407_v32 = vld [vmem:[#allocation2 + $0x58] sm:$0xff]  ;;  %v2409_v33 = vld [vmem:[#allocation3 + $0x10] sm:$0xff] }
 0x19d   : > { %v1023_v29 = vmul.f32 %v2403_v28, %v959_v26  ;;  %v1054_v34 = vadd.f32 %v1022_v17, %v2395_v23  ;;  %v1024_v35 = vmul.f32 %v2409_v33, %v960_v31  ;;  %v961_v37 = vld [vmem:[%s2168_s21 + $0x18] sm:$0xff]  ;;  %v2416_v39 = vld [vmem:[#allocation3 + $0x40] sm:$0xff]  ;;  %v2421_v0 = vld [vmem:[#allocation2 + $0x50] sm:$0xff] }
 0x19e   : > { %v2414_v38 = vld [vmem:[#allocation2 + $0x18] sm:$0xff]  ;;  %v1025_v41 = vmul.f32 %v2416_v39, %v961_v37  ;;  %v962_v21 = vld [vmem:[%s2168_s21 + $0x20] sm:$0xff]  ;;  %v2423_v42 = vld [vmem:[#allocation3 + $0x48] sm:$0xff] }
 0x19f   : > { %v1055_v40 = vadd.f32 %v1023_v29, %v2401_v27  ;;  %1086 = vst [vmem:[%s2174_s17] sm:$0xff] %v1054_v34  ;;  %v1056_v25 = vadd.f32 %v1024_v35, %v2407_v32  ;;  %v1026_v43 = vmul.f32 %v2423_v42, %v962_v21  ;;  %v963_v44 = vld [vmem:[%s2168_s21 + $0x28] sm:$0xff]  ;;  %v2431_v46 = vld [vmem:[#allocation3 + $0x30] sm:$0xff]  ;;  %v965_v36 = vld [vmem:[%s2168_s21 + $0x38] sm:$0xff] }
 0x1a0   : > { %v2429_v45 = vld [vmem:[#allocation2 + $0x68] sm:$0xff]  ;;  %v1057_v48 = vadd.f32 %v1025_v41, %v2414_v38  ;;  %v1027_v49 = vmul.f32 %v2431_v46, %v963_v44  ;;  %v964_v51 = vld [vmem:[%s2168_s21 + $0x30] sm:$0xff]  ;;  %v2447_v56 = vld [vmem:[#allocation3 + $0x38] sm:$0xff] }
 0x1a1   : > { %1087 = vst [vmem:[%s2174_s17 + $0x8] sm:$0xff] %v1055_v40  ;;  %v2437_v30 = vld [vmem:[#allocation2 + $0x8] sm:$0xff]  ;;  %v2439_v52 = vld [vmem:[#allocation3 + $0x70] sm:$0xff]  ;;  %1088 = vst [vmem:[%s2174_s17 + $0x10] sm:$0xff] %v1056_v25  ;;  %v1058_v53 = vadd.f32 %v1026_v43, %v2421_v0  ;;  %v1029_v58 = vmul.f32 %v2447_v56, %v965_v36 }
 0x1a2   : > { %v1028_v54 = vmul.f32 %v2439_v52, %v964_v51  ;;  %v2445_v55 = vld [vmem:[#allocation2 + $0x48] sm:$0xff]  ;;  %1089 = vst [vmem:[%s2174_s17 + $0x18] sm:$0xff] %v1057_v48  ;;  %v1059_v57 = vadd.f32 %v1027_v49, %v2429_v45  ;;  %v966_v59 = vld [vmem:[%s2168_s21 + $0x40] sm:$0xff]  ;;  %v2463_v63 = vld [vmem:[#allocation3 + $0x78] sm:$0xff] }
 0x1a3   : > { %v2453_v60 = vld [vmem:[#allocation2 + $0x40] sm:$0xff]  ;;  %1090 = vst [vmem:[%s2174_s17 + $0x20] sm:$0xff] %v1058_v53  ;;  %v967_v62 = vld [vmem:[%s2168_s21 + $0x48] sm:$0xff]  ;;  %v1061_v1 = vadd.f32 %v1029_v58, %v2445_v55  ;;  %v968_v4 = vld [vmem:[%s2168_s21 + $0x50] sm:$0xff] }
 0x1a4   : > { %v2455_v3 = vld [vmem:[#allocation3 + $0x20] sm:$0xff]  ;;  %v1060_v61 = vadd.f32 %v1028_v54, %v2437_v30  ;;  %1091 = vst [vmem:[%s2174_s17 + $0x28] sm:$0xff] %v1059_v57  ;;  %v1031_v2 = vmul.f32 %v2463_v63, %v967_v62  ;;  %v2469_v7 = vld [vmem:[#allocation2 + $0x10] sm:$0xff]  ;;  %v2471_v8 = vld [vmem:[#allocation3 + $0x18] sm:$0xff] }
 0x1a5   : > { %v1030_v47 = vmul.f32 %v2455_v3, %v966_v59  ;;  %v2461_v50 = vld [vmem:[#allocation2 + $0x20] sm:$0xff]  ;;  %v1032_v5 = vmul.f32 %v2471_v8, %v968_v4  ;;  %v969_v10 = vld [vmem:[%s2168_s21 + $0x58] sm:$0xff]  ;;  %1093 = vst [vmem:[%s2174_s17 + $0x38] sm:$0xff] %v1061_v1  ;;  %v971_v22 = vld [vmem:[%s2168_s21 + $0x68] sm:$0xff] }
 0x1a6   : > { %1092 = vst [vmem:[%s2174_s17 + $0x30] sm:$0xff] %v1060_v61  ;;  %v2477_v11 = vld [vmem:[#allocation2 + $0x38] sm:$0xff]  ;;  %v1063_v6 = vadd.f32 %v1031_v2, %v2461_v50  ;;  %v970_v15 = vld [vmem:[%s2168_s21 + $0x60] sm:$0xff]  ;;  %v2493_v13 = vld [vmem:[#allocation2 + $0x70] sm:$0xff] }
 0x1a7   : > { %v1062_v9 = vadd.f32 %v1030_v47, %v2453_v60  ;;  %v2479_v12 = vld [vmem:[#allocation3 + $0x58] sm:$0xff]  ;;  %v2485_v16 = vld [vmem:[#allocation2 + $0x60] sm:$0xff]  ;;  %v1064_v19 = vadd.f32 %v1032_v5, %v2469_v7  ;;  %v2495_v17 = vld [vmem:[#allocation3 + $0x8] sm:$0xff] }
 0x1a8   : > { %v1033_v14 = vmul.f32 %v2479_v12, %v969_v10  ;;  %v2487_v18 = vld [vmem:[#allocation3] sm:$0xff]  ;;  %1095 = vst [vmem:[%s2174_s17 + $0x48] sm:$0xff] %v1063_v6  ;;  %v1035_v29 = vmul.f32 %v2495_v17, %v971_v22  ;;  %v972_v31 = vld [vmem:[%s2168_s21 + $0x70] sm:$0xff]  ;;  %v2501_v34 = vld [vmem:[#allocation2 + $0x78] sm:$0xff] }
 0x1a9   : > { %1094 = vst [vmem:[%s2174_s17 + $0x40] sm:$0xff] %v1062_v9  ;;  %v1034_v20 = vmul.f32 %v2487_v18, %v970_v15  ;;  %v2503_v35 = vld [vmem:[#allocation3 + $0x60] sm:$0xff]  ;;  %1096 = vst [vmem:[%s2174_s17 + $0x50] sm:$0xff] %v1064_v19  ;;  %v973_v41 = vld [vmem:[%s2168_s21 + $0x78] sm:$0xff] }
 0x1aa   : > { %v1065_v26 = vadd.f32 %v1033_v14, %v2477_v11  ;;  %v1036_v40 = vmul.f32 %v2503_v35, %v972_v31  ;;  %v2509_v21 = vld [vmem:[#allocation2 + $0x28] sm:$0xff]  ;;  %v2511_v25 = vld [vmem:[#allocation3 + $0x50] sm:$0xff]  ;;  %v1067_v43 = vadd.f32 %v1035_v29, %v2493_v13  ;;  %v974_v48 = vld [vmem:[%s2168_s21 + $0x80] sm:$0xff] }
 0x1ab   : > { %v1066_v37 = vadd.f32 %v1034_v20, %v2485_v16  ;;  %v1037_v44 = vmul.f32 %v2511_v25, %v973_v41  ;;  %v975_v49 = vld [vmem:[%s2168_s21 + $0x88] sm:$0xff]  ;;  %v976_v51 = vld [vmem:[%s2168_s21 + $0x90] sm:$0xff]  ;;  %v1038_v54 = vmul.f32 %v2397_v24, %v974_v48  ;;  %v977_v58 = vld [vmem:[%s2168_s21 + $0x98] sm:$0xff] }
 0x1ac   : > { %1097 = vst [vmem:[%s2174_s17 + $0x58] sm:$0xff] %v1065_v26  ;;  %v1068_v53 = vadd.f32 %v1036_v40, %v2501_v34  ;;  %v1039_v36 = vmul.f32 %v2403_v28, %v975_v49  ;;  %v1040_v57 = vmul.f32 %v2409_v33, %v976_v51  ;;  %v978_v59 = vld [vmem:[%s2168_s21 + $0xa0] sm:$0xff]  ;;  %v979_v61 = vld [vmem:[%s2168_s21 + $0xa8] sm:$0xff]  ;;  %1099 = vst [vmem:[%s2174_s17 + $0x68] sm:$0xff] %v1067_v43 }
 0x1ad   : > { %1098 = vst [vmem:[%s2174_s17 + $0x60] sm:$0xff] %v1066_v37  ;;  %v1069_v47 = vadd.f32 %v1037_v44, %v2509_v21  ;;  %v1041_v62 = vmul.f32 %v2416_v39, %v977_v58  ;;  %v1042_v1 = vmul.f32 %v2423_v42, %v978_v59  ;;  %v1043_v24 = vmul.f32 %v2431_v46, %v979_v61  ;;  %v980_v2 = vld [vmem:[%s2168_s21 + $0xb0] sm:$0xff]  ;;  %v981_v28 = vld [vmem:[%s2168_s21 + $0xb8] sm:$0xff]  ;;  %v982_v33 = vld [vmem:[%s2168_s21 + $0xc0] sm:$0xff] }
 0x1ae   : > { %1100 = vst [vmem:[%s2174_s17 + $0x70] sm:$0xff] %v1068_v53  ;;  %v1070_v4 = vadd.f32 %v1038_v54, %v2395_v23  ;;  %v1071_v9 = vadd.f32 %v1039_v36, %v2401_v27  ;;  %v1072_v39 = vadd.f32 %v1040_v57, %v2407_v32  ;;  %v1044_v42 = vmul.f32 %v2439_v52, %v980_v2  ;;  %v983_v5 = vld [vmem:[%s2168_s21 + $0xc8] sm:$0xff]  ;;  %v984_v46 = vld [vmem:[%s2168_s21 + $0xd0] sm:$0xff]  ;;  %v985_v10 = vld [vmem:[%s2168_s21 + $0xd8] sm:$0xff] }
 0x1af   : > { %1101 = vst [vmem:[%s2174_s17 + $0x78] sm:$0xff] %v1069_v47  ;;  %v1073_v6 = vadd.f32 %v1041_v62, %v2414_v38  ;;  %v1074_v14 = vadd.f32 %v1042_v1, %v2421_v0  ;;  %v1075_v23 = vadd.f32 %v1043_v24, %v2429_v45  ;;  %v1045_v27 = vmul.f32 %v2447_v56, %v981_v28  ;;  %v986_v15 = vld [vmem:[%s2168_s21 + $0xe0] sm:$0xff]  ;;  %v987_v32 = vld [vmem:[%s2168_s21 + $0xe8] sm:$0xff]  ;;  %v988_v19 = vld [vmem:[%s2168_s21 + $0xf0] sm:$0xff] }
 0x1b0   : > { %1102 = vst [vmem:[%s2174_s17 + $0x80] sm:$0xff] %v1070_v4  ;;  %1103 = vst [vmem:[%s2174_s17 + $0x88] sm:$0xff] %v1071_v9  ;;  %v1076_v52 = vadd.f32 %v1044_v42, %v2437_v30  ;;  %v1046_v20 = vmul.f32 %v2455_v3, %v982_v33  ;;  %v1047_v38 = vmul.f32 %v2463_v63, %v983_v5  ;;  %v989_v22 = vld [vmem:[%s2168_s21 + $0xf8] sm:$0xff] }
 0x1b1   : > { %1104 = vst [vmem:[%s2174_s17 + $0x90] sm:$0xff] %v1072_v39  ;;  %v1048_v0 = vmul.f32 %v2471_v8, %v984_v46  ;;  %1105 = vst [vmem:[%s2174_s17 + $0x98] sm:$0xff] %v1073_v6  ;;  %v1077_v45 = vadd.f32 %v1045_v27, %v2445_v55  ;;  %v1049_v56 = vmul.f32 %v2479_v12, %v985_v10 }
 0x1b2   : > { %1106 = vst [vmem:[%s2174_s17 + $0xa0] sm:$0xff] %v1074_v14  ;;  %1107 = vst [vmem:[%s2174_s17 + $0xa8] sm:$0xff] %v1075_v23  ;;  %v1050_v30 = vmul.f32 %v2487_v18, %v986_v15  ;;  %v1051_v3 = vmul.f32 %v2495_v17, %v987_v32  ;;  %v1078_v63 = vadd.f32 %v1046_v20, %v2453_v60 }
 0x1b3   : > { %1108 = vst [vmem:[%s2174_s17 + $0xb0] sm:$0xff] %v1076_v52  ;;  %v1079_v8 = vadd.f32 %v1047_v38, %v2461_v50  ;;  %v1080_v26 = vadd.f32 %v1048_v0, %v2469_v7  ;;  %v1052_v55 = vmul.f32 %v2503_v35, %v988_v19  ;;  %1109 = vst [vmem:[%s2174_s17 + $0xb8] sm:$0xff] %v1077_v45 }
 0x1b4   : > { %v1081_v12 = vadd.f32 %v1049_v56, %v2477_v11  ;;  %v1082_v18 = vadd.f32 %v1050_v30, %v2485_v16  ;;  %v1083_v17 = vadd.f32 %v1051_v3, %v2493_v13  ;;  %v1053_v29 = vmul.f32 %v2511_v25, %v989_v22  ;;  %1110 = vst [vmem:[%s2174_s17 + $0xc0] sm:$0xff] %v1078_v63 }
 0x1b5   : > { %1111 = vst [vmem:[%s2174_s17 + $0xc8] sm:$0xff] %v1079_v8  ;;  %1112 = vst [vmem:[%s2174_s17 + $0xd0] sm:$0xff] %v1080_v26  ;;  %v1084_v60 = vadd.f32 %v1052_v55, %v2501_v34 }
 0x1b6   : > { %1113 = vst [vmem:[%s2174_s17 + $0xd8] sm:$0xff] %v1081_v12  ;;  %1114 = vst [vmem:[%s2174_s17 + $0xe0] sm:$0xff] %v1082_v18  ;;  %v1085_v50 = vadd.f32 %v1053_v29, %v2509_v21 }
 0x1b7   : > { %1115 = vst [vmem:[%s2174_s17 + $0xe8] sm:$0xff] %v1083_v17  ;;  %1116 = vst [vmem:[%s2174_s17 + $0xf0] sm:$0xff] %v1084_v60 }
 0x1b8   : > { %1117 = vst [vmem:[%s2174_s17 + $0xf8] sm:$0xff] %v1085_v50 }
 0x1b9   : > { %s2693_s27 = sld [smem:[#allocation24_spill]]  ;;  %s1146_s10 = sshll.u32 %s2174_s17, 4  ;;  %s1147_s10 = int_to_ptr.vmem [resolvable:$true] %s1146_s10 }
 0x1ba   : > { %s2694_s8 = sld [smem:[#allocation23_spill]]  ;;  %s1914_s13 = smov 2048  }
 0x1bb   : > { %s2695_s19 = sld [smem:[#allocation29_spill]]  ;;  %s1915_s6 = smov 4096  }
 0x1bc   : > { %s2696_s21 = sld [smem:[#allocation34_spill]]  ;;  %s1916_s14 = smov 16  }
 0x1bd   : > { %s1917_s15 = smov 128   ;;  %s1918_s17 = smov 8  }
 0x1be   : > { %s1919_s1 = smov 131072   ;;  %s1920_s18 = smov 0  }
 0x1bf   : > { %s1353_s4 = sshll.u32 %s2693_s27, 4 }
 0x1c0   : > { %s1360_s28 = sshll.u32 %s2694_s8, 6 }
 0x1c1   : > { %s1133_s9 = sadd.s32 %s1360_s28, %s1353_s4  ;;  %p2697_p5 = scmp.ne.s32.totalorder %s2695_s19, 0 }
 0x1c2   : > { %s1355_s11 = sshll.u32 %s1133_s9, 7 }
 0x1c3   : > { %s1135_s20 = scalar_lea.hbm %s2696_s21, %s1355_s11  ;;  %1556 = sst [smem:[#allocation16]] (%p2697_p5), %s1914_s13 }
 0x1c4   : > { %1557 = sst [smem:[#allocation16 + $0x1]] (%p2697_p5), %s1915_s6 }
 0x1c5   : > { %1558 = sst [smem:[#allocation16 + $0x2]] (%p2697_p5), %s1916_s14 }
 0x1c6   : > { %1559 = sst [smem:[#allocation16 + $0x3]] (%p2697_p5), %s1917_s15 }
 0x1c7   : > { %1560 = sst [smem:[#allocation16 + $0x4]] (%p2697_p5), %s1917_s15 }
 0x1c8   : > { %1561 = sst [smem:[#allocation16 + $0x5]] (%p2697_p5), %s1918_s17 }
 0x1c9   : > { %1562 = dma.general (%p2697_p5), %s1147_s10, 4096, %s1135_s20, %s1119_s12, %s1919_s1, [#allocation16], %s1920_s18, 0  }
 0x1ca PF: > { %s2698_s24 = sld [smem:[#allocation22_spill]]  ;;  %p1579_p4 = scmp.ge.s32.totalorder %s1899_s7, 2 }
 0x1cb   : > { %s2699_s27 = sld [smem:[#allocation30_spill]] }
 0x1d0   : > { %s1174_s8 = sand.u32 1, %s2698_s24  }
 0x1d1   : > { %p2700_p6 = scmp.ne.s32.totalorder %s2699_s27, 0  ;;  %s1175_s4 = scalar_lea.sflag [#allocation6], %s1174_s8 }
 0x1d3   : > { %p1572_p7 = pnand %p1579_p4, %p2700_p6 }
 0x1d5   : > { %p1573_p11 = pneg %p1572_p7 }
 0x1d7   : > { %1854 = dma.done.wait (%p1573_p11), %s1175_s4, 4096  }
 0x1d8   : > { %1856 = vsyncadd (%p1573_p11), %s1175_s4, 4294963200  ;;  %s26_s7 = sadd.s32 1, %s1899_s7   ;;  %s2701_s28 = sld [smem:[#allocation28_spill]] }
 0x1d9   : > { %p23_p8 = scmp.ge.s32.totalorder %s26_s7, 6   ;;  %s2702_s12 = sld [smem:[#allocation27_spill]] }
 0x1da   : > { %s2703_s19 = sld [smem:[#allocation25_spill]]  ;;  %s2705_s21 = smov %s1863_s22 }
 0x1db   : > { %s2704_s9 = sld [smem:[#allocation26_spill]]  ;;  %s2706_s22 = smov %s1867_s23 }
 0x1dc   : > { %s2708_s24 = smov %s1875_s25  ;;  %s2709_s25 = smov %s1879_s26 }
 0x1dd   : > { %s2711_s27 = smov %s1891_s29  ;;  %25 = sbr.rel (!%p23_p8) target bundleno = 17 (0x11), region = 132 }
 0x1de   : > { %s2707_s23 = smov %s2701_s28  ;;  %s2712_s28 = smov %s1895_s30 }
 0x1df   : > { %s2710_s26 = smov %s2702_s12 }
 0x1e0   : > { %s2713_s29 = smov %s2703_s19 }
 0x1e1   : > { %s2714_s30 = smov %s2704_s9 }
 0x1e2   :  { %1180 = vsyncpa [#allocation5], 1 }
 0x1e3   :  { %1182 = vsyncpa [#allocation5 + $0x1], 1 }
 0x1e4   :  { %1183 = vsyncpa [#allocation8], 1 }
 0x1e5   :  { %1184 = vsyncpa [#allocation11], 1 }
 0x1e6   :  { %1186 = vsyncpa [#allocation11 + $0x1], 1 }
 0x1e7   :  { %1187 = vsyncpa [#allocation6], 1 }
 0x1e8   :  { %1189 = vsyncpa [#allocation6 + $0x1], 1 }

</bundles_post_ra>
